<compile_context>
chip_gen: v7x
topology: tpu7x:2x2x1
jax: 0.10.0
libtpu: 0.0.40
codegen_flags: <defaults>
</compile_context>

<pallas_src>
import math
import functools

import jax
import jax.numpy as jnp
from jax import lax
from jax.experimental import pallas as pl
from jax.experimental.pallas import tpu as pltpu

LN_EPS = 1e-5  # nn.LayerNorm default


# ----------------------------- in-kernel helpers -----------------------------

def _new_gelu(x):
    # NewGELUActivation: 0.5*x*(1+tanh(sqrt(2/pi)*(x + 0.044715*x^3)))
    c = math.sqrt(2.0 / math.pi)
    return 0.5 * x * (1.0 + jnp.tanh(c * (x + 0.044715 * x * x * x)))


def _ln_normalize(x):
    # LayerNorm statistics (biased variance over the last dim).
    mean = jnp.mean(x, axis=-1, keepdims=True)
    var = jnp.mean((x - mean) ** 2, axis=-1, keepdims=True)
    return (x - mean) * lax.rsqrt(var + LN_EPS)


def _mlp_out(x, xn2, cdt, w1_ref, b1_ref, w2_ref, b2_ref, out_dtype):
    # x + fc2(gelu(fc1(xn2)))  -- MXU operands cast to cdt, f32 accumulation.
    h1 = jnp.dot(xn2.astype(cdt), w1_ref[...],
                 preferred_element_type=jnp.float32) + b1_ref[...]
    h1 = _new_gelu(h1)
    y = jnp.dot(h1.astype(cdt), w2_ref[...],
                preferred_element_type=jnp.float32) + b2_ref[...]
    return (x + y).astype(out_dtype)


# --------------------------------- kernels -----------------------------------

def _encoder_block_kernel(
    x_ref,
    ln1_g_ref, ln1_b_ref, ln2_g_ref, ln2_b_ref,
    wqkv_ref, wo_ref,
    w1_ref, b1_ref, w2_ref, b2_ref,
    out_ref, attn_ref,
    ctx_ref,
    *, num_heads,
):
    x = x_ref[0]                                   # (S, D) f32
    S, D = x.shape
    hd = D // num_heads
    cdt = wqkv_ref.dtype                           # MXU operand dtype (f32 or bf16)

    # LayerNorm statistics computed ONCE (LN1 and LN2 normalize the same x);
    # apply the two affine transforms separately -- exact.
    xhat = _ln_normalize(x)                        # (S, D) f32
    xn1 = xhat * ln1_g_ref[...] + ln1_b_ref[...]
    xn2 = xhat * ln2_g_ref[...] + ln2_b_ref[...]

    # ---------------- MLP branch (the module's return value) ----------------
    out_ref[0] = _mlp_out(x, xn2, cdt, w1_ref, b1_ref, w2_ref, b2_ref, out_ref.dtype)

    # ---------------- attention branch: MHA(LN1(x)) + x ----------------
    # Fused QKV projection, one MXU pass with N = 3D; the 1/sqrt(hd) scale is
    # already folded into the Q columns of wqkv (wrapper-side).
    qkv = jnp.dot(xn1.astype(cdt), wqkv_ref[...],
                  preferred_element_type=jnp.float32)          # (S, 3D) f32

    # Per-head attention.  No transposes: QK^T expressed via dot_general contraction
    # dims; softmax normalization deferred to the (S, hd) context; each head's context
    # written into a VMEM scratch at lane offset h*hd so the output projection is a
    # single full-K matmul after the loop.
    for h in range(num_heads):                                 # small static unroll
        q_h = qkv[:, h * hd:(h + 1) * hd].astype(cdt)                    # (S, hd)
        k_h = qkv[:, D + h * hd:D + (h + 1) * hd].astype(cdt)            # (S, hd)
        v_h = qkv[:, 2 * D + h * hd:2 * D + (h + 1) * hd].astype(cdt)    # (S, hd)

        s = lax.dot_general(q_h, k_h, (((1,), (1,)), ((), ())),
                            preferred_element_type=jnp.float32)          # (S, S) = q k^T
        m = jnp.max(s, axis=-1, keepdims=True)
        e = jnp.exp(s - m)                                                # unnormalized
        denom = jnp.sum(e, axis=-1, keepdims=True)

        ctx_h = jnp.dot(e.astype(cdt), v_h,
                        preferred_element_type=jnp.float32)               # (S, hd)
        ctx_h = ctx_h * pl.reciprocal(denom)                              # exact recip
        ctx_ref[:, h * hd:(h + 1) * hd] = ctx_h

    attn = jnp.dot(ctx_ref[...].astype(cdt), wo_ref[...],
                   preferred_element_type=jnp.float32)                    # (S, D)
    # Residual per reference (this tensor is not consumed by the returned value).
    attn_ref[0] = (attn + x).astype(attn_ref.dtype)


def _mlp_only_kernel(x_ref, ln2_g_ref, ln2_b_ref, w1_ref, b1_ref, w2_ref, b2_ref,
                     out_ref):
    # Fast path: the module's return value does not depend on the attention branch.
    x = x_ref[0]                                   # (TS, D)
    cdt = w1_ref.dtype
    xn2 = _ln_normalize(x) * ln2_g_ref[...] + ln2_b_ref[...]
    out_ref[0] = _mlp_out(x, xn2, cdt, w1_ref, b1_ref, w2_ref, b2_ref, out_ref.dtype)


# --------------------------------- wrapper -----------------------------------

def _resident_spec(shape):
    """BlockSpec for a weight/bias resident across the whole grid.

    The index_map is constant, so double-buffering only wastes VMEM: request a
    single buffer via pipeline_mode=pl.Buffered(1) when the API supports it.
    """
    index_map = lambda *_: (0,) * len(shape)
    buffered = getattr(pl, "Buffered", None)
    if buffered is not None:
        try:
            return pl.BlockSpec(shape, index_map, pipeline_mode=buffered(1))
        except TypeError:
            pass
    return pl.BlockSpec(shape, index_map)


def _pick_s_tile(S, target=256):
    # Largest multiple-of-8 divisor of S that is <= target (S itself if S <= target).
    if S <= target:
        return S
    for ts in range(target, 7, -8):
        if S % ts == 0:
            return ts
    return S


def encoder_block(x, params, num_heads, *,
                  compute_dtype=jnp.float32,
                  with_attention_branch=False,
                  vmem_limit_bytes=64 * 1024 * 1024):
    """x: (B, S, D) float32.  params: PyTorch-layout weights (Linear is (out, in)).

    Returns `out = x + MLP(LN2(x))` (the module's return value).
    If with_attention_branch=True, returns (out, attention_residual) where
    attention_residual = MHA(LN1(x)) + x (computed by the reference but unused by it).

    compute_dtype: MXU operand dtype. float32 is exact; jnp.bfloat16 is recommended on
    real TPUs (f32 accumulation is kept either way).
    """
    B, S, D = x.shape
    H = params["w1"].shape[0]                      # 4 * D
    assert D % num_heads == 0
    hd = D // num_heads
    f32 = jnp.float32
    cdt = compute_dtype

    # Host-side glue: transpose Linear weights to (in, out), fuse Q|K|V into one
    # (D, 3D) weight with the 1/sqrt(hd) scale folded into the Q columns, and cast
    # MXU weights to the compute dtype (biases / LN params stay f32).
    scale = 1.0 / math.sqrt(hd)
    wqkv = jnp.concatenate(
        [params["wq"].T * scale, params["wk"].T, params["wv"].T], axis=1).astype(cdt)
    wo = params["wo"].T.astype(cdt)
    w1 = params["w1"].T.astype(cdt)
    w2 = params["w2"].T.astype(cdt)
    ln1_g = params["ln1_g"].reshape(1, D).astype(f32)
    ln1_b = params["ln1_b"].reshape(1, D).astype(f32)
    ln2_g = params["ln2_g"].reshape(1, D).astype(f32)
    ln2_b = params["ln2_b"].reshape(1, D).astype(f32)
    b1 = params["b1"].reshape(1, H).astype(f32)
    b2 = params["b2"].reshape(1, D).astype(f32)

    if with_attention_branch:
        # Full branch: grid over batch, whole sequence resident per step.
        # TODO(synk): flash-style S tiling for long sequences (bounds qkv/(S,S)/h1 VMEM).
        row_spec = pl.BlockSpec((1, S, D), lambda b: (b, 0, 0))
        args = (x, ln1_g, ln1_b, ln2_g, ln2_b, wqkv, wo, w1, b1, w2, b2)
        in_specs = [
            row_spec,
            _resident_spec((1, D)), _resident_spec((1, D)),
            _resident_spec((1, D)), _resident_spec((1, D)),
            _resident_spec((D, 3 * D)), _resident_spec((D, D)),
            _resident_spec((D, H)), _resident_spec((1, H)),
            _resident_spec((H, D)), _resident_spec((1, D)),
        ]
        out_specs = [pl.BlockSpec((1, S, D), lambda b: (b, 0, 0)),
                     pl.BlockSpec((1, S, D), lambda b: (b, 0, 0))]
        out_shape = (jax.ShapeDtypeStruct((B, S, D), x.dtype),
                     jax.ShapeDtypeStruct((B, S, D), x.dtype))
        scratch_shapes = [pltpu.VMEM((S, D), jnp.float32)]     # per-head ctx slab
        grid = (B,)
        dims = ("parallel",)
        kernel = functools.partial(_encoder_block_kernel, num_heads=num_heads)
        flops = B * (2 * S * D * 3 * D + 4 * S * S * D + 2 * S * D * D + 4 * S * D * H)
        transcendentals = B * (num_heads * S * S + S * H)
        n_out = 2
    else:
        # MLP-only fast path: S-row tiling, both grid axes parallel (megacore-friendly).
        TS = _pick_s_tile(S)
        row_spec = pl.BlockSpec((1, TS, D), lambda b, s: (b, s, 0))
        args = (x, ln2_g, ln2_b, w1, b1, w2, b2)
        in_specs = [row_spec,
                    _resident_spec((1, D)), _resident_spec((1, D)),
                    _resident_spec((D, H)), _resident_spec((1, H)),
                    _resident_spec((H, D)), _resident_spec((1, D))]
        out_specs = pl.BlockSpec((1, TS, D), lambda b, s: (b, s, 0))
        out_shape = jax.ShapeDtypeStruct((B, S, D), x.dtype)
        scratch_shapes = []
        grid = (B, S // TS)
        dims = ("parallel", "parallel")
        kernel = _mlp_only_kernel
        flops = B * 4 * S * D * H
        transcendentals = B * S * H
        n_out = 1

    bytes_accessed = (x.size + n_out * B * S * D) * 4 + sum(
        int(a.size) * a.dtype.itemsize for a in args[1:])

    return pl.pallas_call(
        kernel,
        out_shape=out_shape,
        grid_spec=pltpu.PrefetchScalarGridSpec(
            num_scalar_prefetch=0,
            grid=grid,
            in_specs=in_specs,
            out_specs=out_specs,
            scratch_shapes=scratch_shapes,
        ),
        compiler_params=pltpu.CompilerParams(
            dimension_semantics=dims,
            vmem_limit_bytes=vmem_limit_bytes,   # <= v7x physical ceiling; raise on v5e/v6e
        ),
        cost_estimate=pl.CostEstimate(
            flops=int(flops),
            transcendentals=int(transcendentals),
            bytes_accessed=int(bytes_accessed)),
    )(*args)


# -------------------------------- reference ----------------------------------

def _reference(x, params, num_heads):
    # Pure-JAX f32 reference of the same (literal) forward pass, for self-check.
    D = x.shape[-1]
    hd = D // num_heads

    def ln(v, g, b):
        mean = jnp.mean(v, axis=-1, keepdims=True)
        var = jnp.mean((v - mean) ** 2, axis=-1, keepdims=True)
        return (v - mean) * lax.rsqrt(var + LN_EPS) * g + b

    xn1 = ln(x, params["ln1_g"], params["ln1_b"])
    q = xn1 @ params["wq"].T
    k = xn1 @ params["wk"].T
    v = xn1 @ params["wv"].T
    split = lambda t: t.reshape(*t.shape[:2], num_heads, hd).transpose(0, 2, 1, 3)
    q, k, v = split(q), split(k), split(v)
    s = jnp.einsum("bhqd,bhkd->bhqk", q, k) / math.sqrt(hd)
    p = jax.nn.softmax(s, axis=-1)
    o = jnp.einsum("bhqk,bhkd->bhqd", p, v).transpose(0, 2, 1, 3).reshape(x.shape)
    attn = o @ params["wo"].T + x
    xn2 = ln(x, params["ln2_g"], params["ln2_b"])
    h1 = _new_gelu(xn2 @ params["w1"].T + params["b1"])
    out = x + (h1 @ params["w2"].T + params["b2"])
    return out, attn


if __name__ == "__main__":
    # Small but lane-dense demo shapes (D and H multiples of 128).
    B, S, D, num_heads = 2, 16, 128, 4
    H = 4 * D

    key = jax.random.PRNGKey(0)
    ks = jax.random.split(key, 10)
    x = jax.random.normal(ks[0], (B, S, D), jnp.float32)

    params = {
        "ln1_g": jnp.ones((D,), jnp.float32),
        "ln1_b": jnp.zeros((D,), jnp.float32),
        "wq": 0.05 * jax.random.normal(ks[1], (D, D), jnp.float32),
        "wk": 0.05 * jax.random.normal(ks[2], (D, D), jnp.float32),
        "wv": 0.05 * jax.random.normal(ks[3], (D, D), jnp.float32),
        "wo": 0.05 * jax.random.normal(ks[4], (D, D), jnp.float32),
        "ln2_g": jnp.ones((D,), jnp.float32),
        "ln2_b": jnp.zeros((D,), jnp.float32),
        "w1": 0.05 * jax.random.normal(ks[5], (H, D), jnp.float32),
        "b1": 0.01 * jax.random.normal(ks[6], (H,), jnp.float32),
        "w2": 0.05 * jax.random.normal(ks[7], (D, H), jnp.float32),
        "b2": 0.01 * jax.random.normal(ks[8], (D,), jnp.float32),
    }

    ref_out, ref_attn = _reference(x, params, num_heads)

    # Default fast path: MLP-only (the module's return value), S-row tiled.
    out_fast = jax.block_until_ready(encoder_block(x, params, num_heads))
    assert jnp.allclose(out_fast, ref_out, rtol=1e-4, atol=1e-4), "mlp-only mismatch"

    # Full path: also materializes the (unused-by-the-module) attention residual.
    out_full, attn_full = encoder_block(x, params, num_heads,
                                        with_attention_branch=True)
    out_full = jax.block_until_ready(out_full)
    attn_full = jax.block_until_ready(attn_full)
    assert jnp.allclose(out_full, ref_out, rtol=1e-4, atol=1e-4), "f32 out mismatch"
    assert jnp.allclose(attn_full, ref_attn, rtol=1e-3, atol=1e-3), "f32 attn mismatch"

    # NOTE: compute_dtype=jnp.bfloat16 (f32 accumulation) is recommended on real TPU
    # hardware; it is not exercised here because the interpret/CPU fallback used by
    # some sandboxes rejects BF16xBF16=F32 dots.

    print("KERNEL_OK")
</pallas_src>

<mosaic_0001>
module attributes {stable_mosaic.version = 11 : i64} {
  func.func @_mlp_only_kernel(%arg0: i32, %arg1: i32, %arg2: memref<1x16x128xf32, #tpu.memory_space<vmem>>, %arg3: memref<1x128xf32, #tpu.memory_space<vmem>>, %arg4: memref<1x128xf32, #tpu.memory_space<vmem>>, %arg5: memref<128x512xf32, #tpu.memory_space<vmem>>, %arg6: memref<1x512xf32, #tpu.memory_space<vmem>>, %arg7: memref<512x128xf32, #tpu.memory_space<vmem>>, %arg8: memref<1x128xf32, #tpu.memory_space<vmem>>, %arg9: memref<1x16x128xf32, #tpu.memory_space<vmem>>) attributes {dimension_semantics = [#tpu.dimension_semantics<parallel>, #tpu.dimension_semantics<parallel>], iteration_bounds = array<i64: 2, 1>, scalar_prefetch = 0 : i64, scratch_operands = 0 : i64, tpu.core_type = #tpu.core_type<tc>, window_params = [{transform_indices = @transform_0, window_bounds = array<i64: 1, 16, 128>}, {pipeline_mode = #tpu.pipeline_mode<synchronous>, transform_indices = @transform_1, window_bounds = array<i64: 1, 128>}, {pipeline_mode = #tpu.pipeline_mode<synchronous>, transform_indices = @transform_2, window_bounds = array<i64: 1, 128>}, {pipeline_mode = #tpu.pipeline_mode<synchronous>, transform_indices = @transform_3, window_bounds = array<i64: 128, 512>}, {pipeline_mode = #tpu.pipeline_mode<synchronous>, transform_indices = @transform_4, window_bounds = array<i64: 1, 512>}, {pipeline_mode = #tpu.pipeline_mode<synchronous>, transform_indices = @transform_5, window_bounds = array<i64: 512, 128>}, {pipeline_mode = #tpu.pipeline_mode<synchronous>, transform_indices = @transform_6, window_bounds = array<i64: 1, 128>}, {transform_indices = @transform_7, window_bounds = array<i64: 1, 16, 128>}]} {
    %c0 = arith.constant 0 : index
    %c0_0 = arith.constant 0 : index
    %c0_1 = arith.constant 0 : index
    %0 = vector.load %arg2[%c0, %c0_0, %c0_1] : memref<1x16x128xf32, #tpu.memory_space<vmem>>, vector<1x16x128xf32>
    %1 = vector.shape_cast %0 : vector<1x16x128xf32> to vector<16x128xf32>
    %cst = arith.constant dense<0.000000e+00> : vector<16xf32>
    %2 = vector.multi_reduction <add>, %1, %cst [1] : vector<16x128xf32> to vector<16xf32>
    %3 = vector.shape_cast %2 : vector<16xf32> to vector<16x1xf32>
    %cst_2 = arith.constant 1.280000e+02 : f32
    %4 = vector.broadcast %cst_2 : f32 to vector<16x1xf32>
    %5 = arith.divf %3, %4 : vector<16x1xf32>
    %6 = vector.broadcast %5 : vector<16x1xf32> to vector<16x128xf32>
    %7 = arith.subf %1, %6 : vector<16x128xf32>
    %8 = arith.mulf %7, %7 : vector<16x128xf32>
    %cst_3 = arith.constant dense<0.000000e+00> : vector<16xf32>
    %9 = vector.multi_reduction <add>, %8, %cst_3 [1] : vector<16x128xf32> to vector<16xf32>
    %10 = vector.shape_cast %9 : vector<16xf32> to vector<16x1xf32>
    %cst_4 = arith.constant 1.280000e+02 : f32
    %11 = vector.broadcast %cst_4 : f32 to vector<16x1xf32>
    %12 = arith.divf %10, %11 : vector<16x1xf32>
    %13 = vector.broadcast %5 : vector<16x1xf32> to vector<16x128xf32>
    %14 = arith.subf %1, %13 : vector<16x128xf32>
    %cst_5 = arith.constant 9.99999974E-6 : f32
    %15 = vector.broadcast %cst_5 : f32 to vector<16x1xf32>
    %16 = arith.addf %12, %15 : vector<16x1xf32>
    %17 = math.rsqrt %16 : vector<16x1xf32>
    %18 = vector.broadcast %17 : vector<16x1xf32> to vector<16x128xf32>
    %19 = arith.mulf %14, %18 : vector<16x128xf32>
    %c0_6 = arith.constant 0 : index
    %c0_7 = arith.constant 0 : index
    %20 = vector.load %arg3[%c0_6, %c0_7] : memref<1x128xf32, #tpu.memory_space<vmem>>, vector<1x128xf32>
    %21 = vector.broadcast %20 : vector<1x128xf32> to vector<16x128xf32>
    %22 = arith.mulf %19, %21 : vector<16x128xf32>
    %c0_8 = arith.constant 0 : index
    %c0_9 = arith.constant 0 : index
    %23 = vector.load %arg4[%c0_8, %c0_9] : memref<1x128xf32, #tpu.memory_space<vmem>>, vector<1x128xf32>
    %24 = vector.broadcast %23 : vector<1x128xf32> to vector<16x128xf32>
    %25 = arith.addf %22, %24 : vector<16x128xf32>
    %c0_10 = arith.constant 0 : index
    %c0_11 = arith.constant 0 : index
    %26 = vector.load %arg5[%c0_10, %c0_11] : memref<128x512xf32, #tpu.memory_space<vmem>>, vector<128x512xf32>
    %cst_12 = arith.constant dense<0.000000e+00> : vector<16x512xf32>
    %27 = tpu.matmul %25, %26, %cst_12 {dimension_numbers = #tpu.dot_dimension_numbers<[1], [0], [0], [1], [0, 0, 1, 1], [], []>} : vector<16x128xf32>, vector<128x512xf32>, vector<16x512xf32> -> vector<16x512xf32>
    %c0_13 = arith.constant 0 : index
    %c0_14 = arith.constant 0 : index
    %28 = vector.load %arg6[%c0_13, %c0_14] : memref<1x512xf32, #tpu.memory_space<vmem>>, vector<1x512xf32>
    %29 = vector.broadcast %28 : vector<1x512xf32> to vector<16x512xf32>
    %30 = arith.addf %27, %29 : vector<16x512xf32>
    %cst_15 = arith.constant 5.000000e-01 : f32
    %31 = vector.broadcast %cst_15 : f32 to vector<16x512xf32>
    %32 = arith.mulf %31, %30 : vector<16x512xf32>
    %cst_16 = arith.constant 4.471500e-02 : f32
    %33 = vector.broadcast %cst_16 : f32 to vector<16x512xf32>
    %34 = arith.mulf %33, %30 : vector<16x512xf32>
    %35 = arith.mulf %34, %30 : vector<16x512xf32>
    %36 = arith.mulf %35, %30 : vector<16x512xf32>
    %37 = arith.addf %30, %36 : vector<16x512xf32>
    %cst_17 = arith.constant 0.797884583 : f32
    %38 = vector.broadcast %cst_17 : f32 to vector<16x512xf32>
    %39 = arith.mulf %38, %37 : vector<16x512xf32>
    %40 = math.tanh %39 : vector<16x512xf32>
    %cst_18 = arith.constant 1.000000e+00 : f32
    %41 = vector.broadcast %cst_18 : f32 to vector<16x512xf32>
    %42 = arith.addf %41, %40 : vector<16x512xf32>
    %43 = arith.mulf %32, %42 : vector<16x512xf32>
    %c0_19 = arith.constant 0 : index
    %c0_20 = arith.constant 0 : index
    %44 = vector.load %arg7[%c0_19, %c0_20] : memref<512x128xf32, #tpu.memory_space<vmem>>, vector<512x128xf32>
    %cst_21 = arith.constant dense<0.000000e+00> : vector<16x128xf32>
    %45 = tpu.matmul %43, %44, %cst_21 {dimension_numbers = #tpu.dot_dimension_numbers<[1], [0], [0], [1], [0, 0, 1, 1], [], []>} : vector<16x512xf32>, vector<512x128xf32>, vector<16x128xf32> -> vector<16x128xf32>
    %c0_22 = arith.constant 0 : index
    %c0_23 = arith.constant 0 : index
    %46 = vector.load %arg8[%c0_22, %c0_23] : memref<1x128xf32, #tpu.memory_space<vmem>>, vector<1x128xf32>
    %47 = vector.broadcast %46 : vector<1x128xf32> to vector<16x128xf32>
    %48 = arith.addf %45, %47 : vector<16x128xf32>
    %49 = arith.addf %1, %48 : vector<16x128xf32>
    %c0_24 = arith.constant 0 : index
    %c0_25 = arith.constant 0 : index
    %c0_26 = arith.constant 0 : index
    %50 = vector.load %arg9[%c0_24, %c0_25, %c0_26] : memref<1x16x128xf32, #tpu.memory_space<vmem>>, vector<1x16x128xf32>
    %51 = vector.shape_cast %50 : vector<1x16x128xf32> to vector<16x128xf32>
    %52 = vector.shape_cast %49 : vector<16x128xf32> to vector<1x16x128xf32>
    tpu.vector_store %arg9[%c0_24, %c0_25, %c0_26], %52 {strides = array<i32>} : memref<1x16x128xf32, #tpu.memory_space<vmem>>, vector<1x16x128xf32>,
    return
  }
  func.func @transform_0(%arg0: i32, %arg1: i32) -> (i32, i32, i32) {
    %c0_i32 = arith.constant 0 : i32
    %c0_i32_0 = arith.constant 0 : i32
    return %arg0, %arg1, %c0_i32 : i32, i32, i32
  }
  func.func @transform_1(%arg0: i32, %arg1: i32) -> (i32, i32) {
    %c0_i32 = arith.constant 0 : i32
    %c0_i32_0 = arith.constant 0 : i32
    %c0_i32_1 = arith.constant 0 : i32
    return %c0_i32, %c0_i32_0 : i32, i32
  }
  func.func @transform_2(%arg0: i32, %arg1: i32) -> (i32, i32) {
    %c0_i32 = arith.constant 0 : i32
    %c0_i32_0 = arith.constant 0 : i32
    %c0_i32_1 = arith.constant 0 : i32
    return %c0_i32, %c0_i32_0 : i32, i32
  }
  func.func @transform_3(%arg0: i32, %arg1: i32) -> (i32, i32) {
    %c0_i32 = arith.constant 0 : i32
    %c0_i32_0 = arith.constant 0 : i32
    %c0_i32_1 = arith.constant 0 : i32
    return %c0_i32, %c0_i32_0 : i32, i32
  }
  func.func @transform_4(%arg0: i32, %arg1: i32) -> (i32, i32) {
    %c0_i32 = arith.constant 0 : i32
    %c0_i32_0 = arith.constant 0 : i32
    %c0_i32_1 = arith.constant 0 : i32
    return %c0_i32, %c0_i32_0 : i32, i32
  }
  func.func @transform_5(%arg0: i32, %arg1: i32) -> (i32, i32) {
    %c0_i32 = arith.constant 0 : i32
    %c0_i32_0 = arith.constant 0 : i32
    %c0_i32_1 = arith.constant 0 : i32
    return %c0_i32, %c0_i32_0 : i32, i32
  }
  func.func @transform_6(%arg0: i32, %arg1: i32) -> (i32, i32) {
    %c0_i32 = arith.constant 0 : i32
    %c0_i32_0 = arith.constant 0 : i32
    %c0_i32_1 = arith.constant 0 : i32
    return %c0_i32, %c0_i32_0 : i32, i32
  }
  func.func @transform_7(%arg0: i32, %arg1: i32) -> (i32, i32, i32) {
    %c0_i32 = arith.constant 0 : i32
    %c0_i32_0 = arith.constant 0 : i32
    return %arg0, %arg1, %c0_i32 : i32, i32, i32
  }
}

</mosaic_0001>

<bundles_post_ra>
// kernel: tpu_custom_call.1
= control target key start
LH: loop header
LB: loop body
LE: loop exit
PB: predicated region body
PF: predicated region fallthrough
CT: control target
= control target key end

     0   :  { %s2273_s0 = inlined_call_operand.hbm [shape: f32[2,16,128], index: 0, kind: input, shape index: {}]   ;;  %s2274_s1 = inlined_call_operand.hbm [shape: f32[1,128], index: 1, kind: input, shape index: {}]   ;;  %s2275_s2 = inlined_call_operand.hbm [shape: f32[1,128], index: 2, kind: input, shape index: {}]   ;;  %s2276_s3 = inlined_call_operand.hbm [shape: f32[128,512], index: 3, kind: input, shape index: {}]   ;;  %s2277_s4 = inlined_call_operand.hbm [shape: f32[1,512], index: 4, kind: input, shape index: {}]   ;;  %s2278_s5 = inlined_call_operand.hbm [shape: f32[512,128], index: 5, kind: input, shape index: {}]   ;;  %s2279_s6 = inlined_call_operand.hbm [shape: f32[1,128], index: 6, kind: input, shape index: {}]   ;;  %s2280_s7 = inlined_call_operand.hbm [shape: f32[2,16,128], index: 7, kind: output, shape index: {}]  }
   0x1   :  { %2287 = sst [smem:[#allocation20_spill]] %s2274_s1 }
   0x2   :  { %2288 = sst [smem:[#allocation21_spill]] %s2276_s3 }
   0x3   :  { %2289 = sst [smem:[#allocation22_spill]] %s2280_s7 }
   0x4   :  { %12 = vsyncpa [#allocation3], 0 }
   0x5   :  { %14 = vsyncpa [#allocation3 + $0x1], 0 }
   0x6   :  { %15 = vsyncpa [#allocation6], 0 }
   0x7   :  { %16 = vsyncpa [#allocation9], 0 }
   0x8   :  { %17 = vsyncpa [#allocation12], 0 }
   0x9   :  { %18 = vsyncpa [#allocation4], 0 }
   0xa   :  { %20 = vsyncpa [#allocation4 + $0x1], 0  ;;  %s1871_s24 = smov 0   ;;  %s1873_s25 = smov 0  }
   0xb   :  { %s1875_s26 = smov 0   ;;  %s1877_s27 = smov 0  }
   0xc   :  { %s1879_s28 = smov 0   ;;  %s1881_s29 = smov 0  }
   0xd LB: > { %s2284_s30 = sadd.s32 4294967295, %s1814_s29   ;;  %p1138_p0 = scmp.ge.s32.totalorder %s1814_s29, 1  ;;  %s1814_s29 = sphi %s1881_s29, %s26_s29   ;;  %s1810_s28 = sphi %s1879_s28, %s2313_s28   ;;  %s1806_s27 = sphi %s1877_s27, %s2312_s27   ;;  %s1802_s26 = sphi %s1875_s26, %s2311_s26   ;;  %s1798_s25 = sphi %s1873_s25, %s2310_s25   ;;  %s1794_s24 = sphi %s1871_s24, %s2309_s24  }
   0xe   : > { %p1905_p1 = scmp.eq.s32.totalorder %s2284_s30, 0  ;;  %p225_p2 = scmp.lt.s32.totalorder %s1814_s29, 3 }
   0xf   : > { %s1816_s10 = smov [#allocation5]   ;;  %s1817_s12 = smov [#allocation8]  }
  0x10   : > { %s2290_s8 = scalar_select %p1905_p1, 1, 0 }
  0x11   : > { %p1910_p3 = pnand %p1138_p0, %p225_p2  ;;  %s238_s11 = sshll.u32 %s1816_s10, 4  ;;  %s239_s11 = int_to_ptr.vmem [resolvable:$true] %s238_s11 }
  0x12   : > { %s259_s13 = sshll.u32 %s1817_s12, 4  ;;  %s1818_s15 = smov [#allocation11]   ;;  %s1923_s13 = int_to_ptr.vmem [resolvable:$true] %s259_s13 }
  0x13   : > { %s2291_s9 = scalar_select %p1910_p3, 1, 0 }
  0x14   : > { %p1400_p5 = pneg %p1910_p3  ;;  %s1925_s16 = sshll.u32 %s1818_s15, 4  ;;  %s284_s16 = int_to_ptr.vmem [resolvable:$true] %s1925_s16 }
  0x15   : > { %s2293_s1 = sld [smem:[#allocation20_spill]] }
  0x16   : > { %p1919_p6 = pnand %p1400_p5, %p1905_p1 }
  0x18   : > { %p1935_p8 = pneg %p1919_p6 }
  0x1b   : > { %s1522_s19 = scalar_lea.hbm %s2293_s1, 16 }
  0x1c   : > { %p1523_p7 = scmp.ne.s32.totalorder %s2293_s1, %s1522_s19  ;;  %p1529_p11 = scmp.lt.u32.totalorder %s1522_s19, %s2293_s1 }
  0x1e   : > { %p1525_p9 = pnand %p1935_p8, %p1523_p7 }
  0x20   : > { %p1526_p10 = pneg %p1525_p9 }
  0x22   : > { %p1531_p12 = pnand %p1529_p11, %p1526_p10 }
  0x24   : > { %1534 = shalt.err (!%p1531_p12)
}
  0x25   : > { %s1535_s12 = scalar_lea.vmem %s239_s11, 16  ;;  %s1542_s15 = scalar_lea.vmem %s239_s11, 32 }
  0x26   : > { %p1536_p13 = scmp.ne.s32.totalorder %s239_s11, %s1535_s12  ;;  %p1543_p5 = scmp.lt.s32.totalorder %s239_s11, %s239_s11 }
  0x27   : > { %p1544_p4 = scmp.lt.s32.totalorder %s1542_s15, %s1535_s12 }
  0x28   : > { %p1538_p0 = pnand %p1536_p13, %p1935_p8 }
  0x29   : > { %p1545_p3 = por %p1544_p4, %p1543_p5 }
  0x2a   : > { %p1539_p2 = pneg %p1538_p0 }
  0x2c   : > { %p1546_p1 = pnand %p1545_p3, %p1539_p2 }
  0x2e   : > { %1549 = shalt.err (!%p1546_p1)
}
  0x2f   : > { %1403 = dma.hbm_to_vmem [thread:$0]  (!%p1919_p6), %s2293_s1, 16, %s239_s11, [#allocation6]  }
  0x30   : > { %s2295_s3 = sld [smem:[#allocation21_spill]] }
  0x36   : > { %s1550_s21 = scalar_lea.hbm %s2295_s3, 8192 }
  0x37   : > { %p1551_p7 = scmp.ne.s32.totalorder %s2295_s3, %s1550_s21  ;;  %p1557_p1 = scmp.lt.u32.totalorder %s1550_s21, %s2295_s3 }
  0x39   : > { %p1553_p9 = pnand %p1551_p7, %p1935_p8 }
  0x3b   : > { %p1554_p4 = pneg %p1553_p9 }
  0x3d   : > { %p1559_p3 = pnand %p1557_p1, %p1554_p4 }
  0x3f   : > { %1562 = shalt.err (!%p1559_p3)
}
  0x40   : > { %s1563_s11 = scalar_lea.vmem %s1923_s13, 8192  ;;  %p1571_p13 = scmp.lt.s32.totalorder %s1923_s13, %s1923_s13 }
  0x41   : > { %p1564_p10 = scmp.ne.s32.totalorder %s1923_s13, %s1563_s11  ;;  %p1572_p0 = scmp.lt.s32.totalorder %s1563_s11, %s1563_s11 }
  0x43   : > { %p1566_p11 = pnand %p1564_p10, %p1935_p8  ;;  %p1573_p2 = por %p1572_p0, %p1571_p13 }
  0x45   : > { %p1567_p12 = pneg %p1566_p11 }
  0x47   : > { %p1574_p5 = pnand %p1573_p2, %p1567_p12 }
  0x49   : > { %1577 = shalt.err (!%p1574_p5)
}
  0x4a   : > { %s1819_s17 = smov 512   ;;  %s1820_s18 = smov 32  }
  0x4b   : > { %1409 = dma.hbm_to_vmem [thread:$0]  (!%p1919_p6), %s2295_s3, 8192, %s1923_s13, [#allocation9], %s1819_s17, %s1819_s17, %s1820_s18  }
  0x4c   : > { %s1578_s10 = scalar_lea.hbm %s2278_s5, 8192 }
  0x4d   : > { %p1579_p7 = scmp.ne.s32.totalorder %s2278_s5, %s1578_s10  ;;  %p1585_p1 = scmp.lt.u32.totalorder %s1578_s10, %s2278_s5 }
  0x4f   : > { %p1581_p9 = pnand %p1579_p7, %p1935_p8 }
  0x51   : > { %p1582_p4 = pneg %p1581_p9 }
  0x53   : > { %p1587_p3 = pnand %p1585_p1, %p1582_p4 }
  0x55   : > { %1590 = shalt.err (!%p1587_p3)
}
  0x56   : > { %s1591_s19 = scalar_lea.vmem %s284_s16, 8192  ;;  %p1599_p13 = scmp.lt.s32.totalorder %s284_s16, %s284_s16 }
  0x57   : > { %p1592_p10 = scmp.ne.s32.totalorder %s284_s16, %s1591_s19  ;;  %p1600_p0 = scmp.lt.s32.totalorder %s1591_s19, %s1591_s19 }
  0x59   : > { %p1594_p11 = pnand %p1592_p10, %p1935_p8  ;;  %p1601_p2 = por %p1600_p0, %p1599_p13 }
  0x5b   : > { %p1595_p12 = pneg %p1594_p11 }
  0x5d   : > { %p1602_p5 = pnand %p1601_p2, %p1595_p12 }
  0x5f   : > { %1605 = shalt.err (!%p1602_p5)
}
  0x60   : > { %s1821_s13 = smov 128   ;;  %s1822_s17 = smov 8  }
  0x61   : > { %1415 = dma.hbm_to_vmem [thread:$0]  (!%p1919_p6), %s2278_s5, 8192, %s284_s16, [#allocation12], %s1821_s13, %s1821_s13, %s1822_s17  }
  0x62   : > { %s1823_s20 = smov [#allocation7]   ;;  %s1824_s23 = smov [#allocation10]  }
  0x63   : > { %s249_s21 = sshll.u32 %s1823_s20, 4  ;;  %s273_s10 = sshll.u32 %s1824_s23, 4  ;;  %s250_s21 = int_to_ptr.vmem [resolvable:$true] %s249_s21  ;;  %s274_s10 = int_to_ptr.vmem [resolvable:$true] %s273_s10 }
  0x64   : > { %s1606_s11 = scalar_lea.hbm %s2275_s2, 16 }
  0x65   : > { %p1607_p7 = scmp.ne.s32.totalorder %s2275_s2, %s1606_s11  ;;  %p1613_p1 = scmp.lt.u32.totalorder %s1606_s11, %s2275_s2 }
  0x67   : > { %p1609_p9 = pnand %p1607_p7, %p1935_p8 }
  0x69   : > { %p1610_p4 = pneg %p1609_p9 }
  0x6b   : > { %p1615_p3 = pnand %p1613_p1, %p1610_p4 }
  0x6d   : > { %1618 = shalt.err (!%p1615_p3)
}
  0x6e   : > { %s1619_s16 = scalar_lea.vmem %s250_s21, 16  ;;  %s1626_s30 = scalar_lea.vmem %s250_s21, 32 }
  0x6f   : > { %p1620_p10 = scmp.ne.s32.totalorder %s250_s21, %s1619_s16  ;;  %p1627_p13 = scmp.lt.s32.totalorder %s250_s21, %s250_s21 }
  0x70   : > { %p1628_p0 = scmp.lt.s32.totalorder %s1626_s30, %s1619_s16 }
  0x71   : > { %p1622_p11 = pnand %p1620_p10, %p1935_p8 }
  0x72   : > { %p1629_p2 = por %p1628_p0, %p1627_p13 }
  0x73   : > { %p1623_p12 = pneg %p1622_p11 }
  0x75   : > { %p1630_p5 = pnand %p1629_p2, %p1623_p12 }
  0x77   : > { %1633 = shalt.err (!%p1630_p5)
}
  0x78   : > { %1406 = dma.hbm_to_vmem [thread:$0]  (!%p1919_p6), %s2275_s2, 16, %s250_s21, [#allocation6]  }
  0x79   : > { %s1634_s20 = scalar_lea.hbm %s2277_s4, 64 }
  0x7a   : > { %p1635_p7 = scmp.ne.s32.totalorder %s2277_s4, %s1634_s20  ;;  %p1641_p1 = scmp.lt.u32.totalorder %s1634_s20, %s2277_s4 }
  0x7c   : > { %p1637_p9 = pnand %p1635_p7, %p1935_p8 }
  0x7e   : > { %p1638_p4 = pneg %p1637_p9 }
  0x80   : > { %p1643_p3 = pnand %p1641_p1, %p1638_p4 }
  0x82   : > { %1646 = shalt.err (!%p1643_p3)
}
  0x83   : > { %s1647_s19 = scalar_lea.vmem %s274_s10, 64  ;;  %p1655_p13 = scmp.lt.s32.totalorder %s274_s10, %s274_s10 }
  0x84   : > { %p1648_p10 = scmp.ne.s32.totalorder %s274_s10, %s1647_s19  ;;  %p1656_p0 = scmp.lt.s32.totalorder %s1647_s19, %s1647_s19 }
  0x86   : > { %p1650_p11 = pnand %p1648_p10, %p1935_p8  ;;  %p1657_p2 = por %p1656_p0, %p1655_p13 }
  0x88   : > { %p1651_p12 = pneg %p1650_p11 }
  0x8a   : > { %p1658_p5 = pnand %p1657_p2, %p1651_p12 }
  0x8c   : > { %1661 = shalt.err (!%p1658_p5)
}
  0x8d   : > { %1412 = dma.hbm_to_vmem [thread:$0]  (!%p1919_p6), %s2277_s4, 64, %s274_s10, [#allocation9]  }
  0x8e   : > { %s1825_s30 = smov [#allocation13]   ;;  %s1662_s7 = scalar_lea.hbm %s2279_s6, 16 }
  0x8f   : > { %s297_s1 = sshll.u32 %s1825_s30, 4  ;;  %p1663_p7 = scmp.ne.s32.totalorder %s2279_s6, %s1662_s7  ;;  %s298_s1 = int_to_ptr.vmem [resolvable:$true] %s297_s1 }
  0x90   : > { %p1669_p1 = scmp.lt.u32.totalorder %s1662_s7, %s2279_s6 }
  0x91   : > { %p1665_p9 = pnand %p1663_p7, %p1935_p8 }
  0x93   : > { %p1666_p4 = pneg %p1665_p9 }
  0x95   : > { %p1671_p3 = pnand %p1669_p1, %p1666_p4 }
  0x97   : > { %1674 = shalt.err (!%p1671_p3)
}
  0x98   : > { %s1675_s10 = scalar_lea.vmem %s298_s1, 16  ;;  %s1682_s11 = scalar_lea.vmem %s298_s1, 32 }
  0x99   : > { %p1676_p10 = scmp.ne.s32.totalorder %s298_s1, %s1675_s10  ;;  %p1683_p13 = scmp.lt.s32.totalorder %s298_s1, %s298_s1 }
  0x9a   : > { %p1684_p0 = scmp.lt.s32.totalorder %s1682_s11, %s1675_s10 }
  0x9b   : > { %p1678_p11 = pnand %p1676_p10, %p1935_p8 }
  0x9c   : > { %p1685_p2 = por %p1684_p0, %p1683_p13 }
  0x9d   : > { %p1679_p12 = pneg %p1678_p11 }
  0x9f   : > { %p1686_p5 = pnand %p1685_p2, %p1679_p12 }
  0xa1   : > { %1689 = shalt.err (!%p1686_p5)
}
  0xa2   : > { %1418 = dma.hbm_to_vmem [thread:$0]  (!%p1919_p6), %s2279_s6, 16, %s298_s1, [#allocation12]  }
  0xa3   : > { %s1137_s22 = sadd.s32 4294967294, %s1814_s29   ;;  %s38_s16 = sadd.s32 1, %s1810_s28 }
  0xa4   : > { %p40_p8 = scmp.ge.s32.totalorder %s38_s16, 2  ;;  %s47_s14 = sadd.s32 1, %s1802_s26 }
  0xa5   : > { %p54_p7 = scmp.ne.s32.totalorder %s1802_s26, %s1798_s25  ;;  %p55_p9 = scmp.eq.s32.totalorder %s1814_s29, 0 }
  0xa6   : > { %s2315_s16 = smov (%p40_p8, %s38_s16), 0  ;;  %p60_p1 = scmp.ne.s32.totalorder %s1798_s25, %s1794_s24 }
  0xa7   : > { %p2058_p4 = por %p55_p9, %p54_p7  ;;  %s42_s1 = ssub.s32 %s1810_s28, %s2315_s16 }
  0xa8   : > { %s2297_s18 = sadd.s32 4294967295, %s1814_s29   ;;  %p45_p3 = scmp.eq.s32.totalorder %s42_s1, 0 }
  0xa9   : > { %p212_p6 = scmp.eq.s32.totalorder %s2297_s18, 1  ;;  %p2298_p10 = scmp.ne.s32.totalorder %s2290_s8, 0 }
  0xaa   : > { %p218_p13 = scmp.eq.s32.totalorder %s1137_s22, 1  ;;  %p1433_p2 = scmp.lt.s32.totalorder %s1814_s29, 2 }
  0xab   : > { %p2070_p11 = por %p2298_p10, %p60_p1  ;;  %p2074_p12 = por %p212_p6, %p54_p7 }
  0xac   : > { %s2079_s20 = scalar_select %p45_p3, %s1802_s26, %s47_s14  }
  0xad   : > { %s2300_s7 = scalar_select %p2074_p12, 1, 0 }
  0xae   : > { %p2081_p0 = por %p218_p13, %p60_p1  ;;  %s308_s12 = sand.u32 1, %s1802_s26  }
  0xaf   : > { %s1166_s15 = sshll.u32 %s1810_s28, 8  ;;  %s1146_s10 = sshll.u32 %s308_s12, 4 }
  0xb0   : > { %s2301_s23 = scalar_select %p2081_p0, 1, 0 }
  0xb1   : > { %s2091_s21 = scalar_lea.hbm %s2273_s0, %s1166_s15  ;;  %s312_s22 = scalar_lea.vmem [#allocation2], %s1146_s10 }
  0xb2   : > { %s321_s14 = sshll.u32 %s312_s22, 4  ;;  %p2095_p5 = pnand %p1433_p2, %p2058_p4  ;;  %s2099_s14 = int_to_ptr.vmem [resolvable:$true] %s321_s14 }
  0xb3   : > { %s2101_s18 = scalar_lea.sflag [#allocation3], %s308_s12  ;;  %s1690_s11 = scalar_lea.hbm %s2091_s21, 256 }
  0xb4   : > { %p1691_p8 = scmp.ne.s32.totalorder %s2091_s21, %s1690_s11  ;;  %p1692_p7 = pneg %p2095_p5 }
  0xb5   : > { %s1695_s10 = scalar_lea.hbm %s2273_s0, 512  ;;  %p1696_p4 = scmp.lt.u32.totalorder %s2091_s21, %s2273_s0 }
  0xb6   : > { %p1693_p9 = pnand %p1692_p7, %p1691_p8  ;;  %p1697_p6 = scmp.lt.u32.totalorder %s1695_s10, %s1690_s11 }
  0xb7   : > { %p1699_p10 = scmp.lt.u32.totalorder %s1690_s11, %s2091_s21 }
  0xb8   : > { %p1694_p1 = pneg %p1693_p9  ;;  %p1698_p3 = por %p1697_p6, %p1696_p4 }
  0xba   : > { %p1700_p13 = por %p1699_p10, %p1698_p3 }
  0xbc   : > { %p1701_p2 = pnand %p1700_p13, %p1694_p1 }
  0xbe   : > { %1704 = shalt.err (!%p1701_p2)
}
  0xbf   : > { %s1705_s12 = scalar_lea.vmem %s2099_s14, 256  ;;  %s1826_s15 = smov [#allocation2]  }
  0xc0   : > { %p1706_p8 = scmp.ne.s32.totalorder %s2099_s14, %s1705_s12  ;;  %s1710_s30 = sshll.u32 %s1826_s15, 4  ;;  %s1711_s30 = int_to_ptr.vmem [resolvable:$false] %s1710_s30 }
  0xc1   : > { %s1712_s19 = scalar_lea.vmem %s1711_s30, 512  ;;  %p1713_p12 = scmp.lt.s32.totalorder %s2099_s14, %s1711_s30 }
  0xc2   : > { %p1708_p9 = pnand %p1706_p8, %p1692_p7  ;;  %p1714_p4 = scmp.lt.s32.totalorder %s1712_s19, %s1705_s12 }
  0xc4   : > { %p1709_p0 = pneg %p1708_p9  ;;  %p1715_p6 = por %p1714_p4, %p1713_p12 }
  0xc6   : > { %p1716_p3 = pnand %p1715_p6, %p1709_p0 }
  0xc8   : > { %1719 = shalt.err (!%p1716_p3)
}
  0xc9   : > { %1422 = dma.hbm_to_vmem [thread:$0]  (!%p2095_p5), %s2091_s21, 256, %s2099_s14, %s2101_s18, %s1821_s13, %s1821_s13, %s1822_s17  }
  0xca   : > { %p2303_p7 = scmp.ne.s32.totalorder %s2291_s9, 0 }
  0xcb   : > { %s2135_s11 = sand.u32 (!%p2303_p7), 1, %s1798_s25  }
  0xcc   : > { %333 = sbr.rel (%p2303_p7) target bundleno = 1013 (0x3f5), region = 48  ;;  %s1150_s10 = sshll.u32 (!%p2303_p7), %s2135_s11, 4 }
  0xcd   : > { %s336_s22 = scalar_lea.sflag (!%p2303_p7), [#allocation3], %s2135_s11  ;;  %s339_s1 = scalar_lea.vmem (!%p2303_p7), [#allocation2], %s1150_s10 }
  0xd3   : > { %1773 = dma.done.wait (%p2070_p11), %s336_s22, 256  }
  0xd4   : > { %1775 = vsyncadd (%p2070_p11), %s336_s22, 4294967040  ;;  %p2304_p12 = scmp.ne.s32.totalorder %s2290_s8, 0 }
  0xd6   : > { %1777 = dma.done.wait (%p2304_p12), [#allocation6], 32  }
  0xd7   : > { %1779 = vsyncadd (%p2304_p12), [#allocation6], 4294967264 }
  0xd8   : > { %1781 = dma.done.wait (%p2304_p12), [#allocation9], 8256  }
  0xd9   : > { %1783 = vsyncadd (%p2304_p12), [#allocation9], 4294959040 }
  0xda   : > { %1785 = dma.done.wait (%p2304_p12), [#allocation12], 8208  }
  0xdb   : > { %1787 = vsyncadd (%p2304_p12), [#allocation12], 4294959088  ;;  %v2157_v0 = vld [vmem:[%s339_s1] sm:$0xff]  ;;  %v2160_v1 = vld [vmem:[%s339_s1 + $0x8] sm:$0xff]  ;;  %s393_s8 = scalar_lea.vmem [#allocation14], %s1150_s10  ;;  %s1167_s13 = sshll.u32 %s1806_s27, 8 }
  0xdc   : > { %398 = vadd.xlane.f32.xlu0 %v2157_v0  ;;  %v440_v2 = vld [vmem:[#allocation8 + $0x8] sm:$0xff]  ;;  %v442_v4 = vld [vmem:[#allocation8 + $0x18] sm:$0xff]  ;;  %v439_v7 = vld [vmem:[#allocation8] sm:$0xff]  ;;  %s992_s9 = sshll.u32 %s393_s8, 4  ;;  %s2305_s21 = sld [smem:[#allocation22_spill]]  ;;  %s2218_s9 = int_to_ptr.vmem [resolvable:$true] %s992_s9 }
  0xdd   : > { %v444_v3 = vld [vmem:[#allocation8 + $0x28] sm:$0xff]  ;;  %v446_v6 = vld [vmem:[#allocation8 + $0x38] sm:$0xff]  ;;  %v443_v8 = vld [vmem:[#allocation8 + $0x20] sm:$0xff]  ;;  %s977_s18 = scalar_lea.sflag [#allocation4], %s2135_s11  ;;  %s1720_s12 = scalar_lea.vmem %s2218_s9, 256 }
  0xde   : > { %v1244_v5 = vpack.c.bf16 %v444_v3, %v440_v2  ;;  %v1276_v9 = vpack.c.bf16 %v446_v6, %v442_v4  ;;  %v1246_v10 = vpack.c.bf16 %v443_v8, %v439_v7  ;;  %v441_v11 = vld [vmem:[#allocation8 + $0x10] sm:$0xff]  ;;  %v448_v13 = vld [vmem:[#allocation8 + $0x48] sm:$0xff]  ;;  %v450_v16 = vld [vmem:[#allocation8 + $0x58] sm:$0xff]  ;;  %p1721_p11 = scmp.ne.s32.totalorder %s2218_s9, %s1720_s12  ;;  %p2306_p0 = scmp.ne.s32.totalorder %s2300_s7, 0 }
  0xdf   : > { %v445_v12 = vld [vmem:[#allocation8 + $0x30] sm:$0xff]  ;;  %v452_v15 = vld [vmem:[#allocation8 + $0x68] sm:$0xff]  ;;  %v454_v17 = vld [vmem:[#allocation8 + $0x78] sm:$0xff]  ;;  %s1828_s27 = smov [#allocation14]  }
  0xe0   : > { %400 = vadd.xlane.f32.xlu0 %v2160_v1  ;;  %1245 = vmatprep.subr.bf16.mxu0 %v1244_v5  ;;  %v1278_v14 = vpack.c.bf16 %v445_v12, %v441_v11  ;;  %v1248_v18 = vpack.c.bf16 %v452_v15, %v448_v13  ;;  %v1280_v19 = vpack.c.bf16 %v454_v17, %v450_v16  ;;  %v447_v20 = vld [vmem:[#allocation8 + $0x40] sm:$0xff]  ;;  %v449_v22 = vld [vmem:[#allocation8 + $0x50] sm:$0xff]  ;;  %v456_v25 = vld [vmem:[#allocation8 + $0x88] sm:$0xff]  ;;  %p1722_p5 = pnand %p1721_p11, %p2306_p0  ;;  %s1724_s15 = sshll.u32 %s1828_s27, 4  ;;  %s1725_s15 = int_to_ptr.vmem [resolvable:$false] %s1724_s15 }
  0xe1   : > { %1277 = vmatprep.subr.bf16.mxu1 %v1276_v9  ;;  %1247 = vmatpush1.bf16.msra.mxu0 %v1246_v10  ;;  %v451_v21 = vld [vmem:[#allocation8 + $0x60] sm:$0xff]  ;;  %v453_v24 = vld [vmem:[#allocation8 + $0x70] sm:$0xff]  ;;  %v460_v26 = vld [vmem:[#allocation8 + $0xa8] sm:$0xff]  ;;  %s1726_s30 = scalar_lea.vmem %s1725_s15, 512  ;;  %p1727_p10 = scmp.lt.s32.totalorder %s2218_s9, %s1725_s15 }
  0xe2   : > { %1279 = vmatpush1.bf16.msra.mxu1 %v1278_v14  ;;  %v1250_v23 = vpack.c.bf16 %v451_v21, %v447_v20  ;;  %1249 = vmatprep.subr.bf16.mxu0 %v1248_v18  ;;  %v1282_v27 = vpack.c.bf16 %v453_v24, %v449_v22  ;;  %v1252_v28 = vpack.c.bf16 %v460_v26, %v456_v25  ;;  %v458_v29 = vld [vmem:[#allocation8 + $0x98] sm:$0xff]  ;;  %v455_v31 = vld [vmem:[#allocation8 + $0x80] sm:$0xff]  ;;  %v457_v34 = vld [vmem:[#allocation8 + $0x90] sm:$0xff]  ;;  %v1827_v24 = vmov 0.0   ;;  %s2223_s14 = scalar_lea.hbm %s2305_s21, %s1167_s13  ;;  %p1723_p1 = pneg %p1722_p5 }
  0xe3   : > { %1281 = vmatprep.subr.bf16.mxu1 %v1280_v19  ;;  %v462_v30 = vld [vmem:[#allocation8 + $0xb8] sm:$0xff]  ;;  %v459_v33 = vld [vmem:[#allocation8 + $0xa0] sm:$0xff]  ;;  %v461_v35 = vld [vmem:[#allocation8 + $0xb0] sm:$0xff]  ;;  %589 = vmatprep.mubr.f32.mxu0 %v1827_v24  ;;  %p1728_p13 = scmp.lt.s32.totalorder %s1726_s30, %s1720_s12 }
  0xe4   : > { %v1284_v32 = vpack.c.bf16 %v462_v30, %v458_v29  ;;  %v1254_v36 = vpack.c.bf16 %v459_v33, %v455_v31  ;;  %v1286_v37 = vpack.c.bf16 %v461_v35, %v457_v34  ;;  %v464_v46 = vld [vmem:[#allocation8 + $0xc8] sm:$0xff]  ;;  %v466_v48 = vld [vmem:[#allocation8 + $0xd8] sm:$0xff]  ;;  %v463_v51 = vld [vmem:[#allocation8 + $0xc0] sm:$0xff]  ;;  %666 = vmatprep.mubr.f32.mxu1 %v1827_v24 }
  0xe5   : > { %1251 = vmatpush1.bf16.msra.mxu0 %v1250_v23  ;;  %v468_v47 = vld [vmem:[#allocation8 + $0xe8] sm:$0xff]  ;;  %v470_v50 = vld [vmem:[#allocation8 + $0xf8] sm:$0xff]  ;;  %v467_v52 = vld [vmem:[#allocation8 + $0xe0] sm:$0xff]  ;;  %p1729_p2 = por %p1728_p13, %p1727_p10 }
  0xe6   : > { %1283 = vmatpush1.bf16.msra.mxu1 %v1282_v27  ;;  %1253 = vmatprep.subr.bf16.mxu0 %v1252_v28  ;;  %v1256_v49 = vpack.c.bf16 %v468_v47, %v464_v46  ;;  %v1288_v53 = vpack.c.bf16 %v470_v50, %v466_v48  ;;  %v1258_v54 = vpack.c.bf16 %v467_v52, %v463_v51  ;;  %v465_v55 = vld [vmem:[#allocation8 + $0xd0] sm:$0xff]  ;;  %v472_v58 = vld [vmem:[#allocation8 + $0x108] sm:$0xff]  ;;  %v474_v60 = vld [vmem:[#allocation8 + $0x118] sm:$0xff] }
  0xe7   : > { %1285 = vmatprep.subr.bf16.mxu1 %v1284_v32  ;;  %v469_v56 = vld [vmem:[#allocation8 + $0xf0] sm:$0xff]  ;;  %v476_v59 = vld [vmem:[#allocation8 + $0x128] sm:$0xff]  ;;  %v478_v62 = vld [vmem:[#allocation8 + $0x138] sm:$0xff]  ;;  %p1730_p8 = pnand %p1729_p2, %p1723_p1 }
  0xe8   : > { %v1290_v57 = vpack.c.bf16 %v469_v56, %v465_v55  ;;  %v1260_v61 = vpack.c.bf16 %v476_v59, %v472_v58  ;;  %v471_v63 = vld [vmem:[#allocation8 + $0x100] sm:$0xff]  ;;  %v1292_v3 = vpack.c.bf16 %v478_v62, %v474_v60  ;;  %v473_v5 = vld [vmem:[#allocation8 + $0x110] sm:$0xff]  ;;  %v480_v8 = vld [vmem:[#allocation8 + $0x148] sm:$0xff] }
  0xe9   : > { %1255 = vmatpush1.bf16.msra.mxu0 %v1254_v36  ;;  %v475_v2 = vld [vmem:[#allocation8 + $0x120] sm:$0xff]  ;;  %v477_v6 = vld [vmem:[#allocation8 + $0x130] sm:$0xff]  ;;  %v484_v9 = vld [vmem:[#allocation8 + $0x168] sm:$0xff] }
  0xea   : > { %1287 = vmatpush1.bf16.msra.mxu1 %v1286_v37  ;;  %1257 = vmatprep.subr.bf16.mxu0 %v1256_v49  ;;  %v1262_v4 = vpack.c.bf16 %v475_v2, %v471_v63  ;;  %v1294_v7 = vpack.c.bf16 %v477_v6, %v473_v5  ;;  %v482_v10 = vld [vmem:[#allocation8 + $0x158] sm:$0xff]  ;;  %v1264_v11 = vpack.c.bf16 %v484_v9, %v480_v8  ;;  %v479_v13 = vld [vmem:[#allocation8 + $0x140] sm:$0xff]  ;;  %v481_v17 = vld [vmem:[#allocation8 + $0x150] sm:$0xff] }
  0xeb   : > { %1289 = vmatprep.subr.bf16.mxu1 %v1288_v53  ;;  %v486_v12 = vld [vmem:[#allocation8 + $0x178] sm:$0xff]  ;;  %v483_v14 = vld [vmem:[#allocation8 + $0x160] sm:$0xff]  ;;  %v485_v18 = vld [vmem:[#allocation8 + $0x170] sm:$0xff] }
  0xec   : > { %v1296_v15 = vpack.c.bf16 %v486_v12, %v482_v10  ;;  %v1266_v16 = vpack.c.bf16 %v483_v14, %v479_v13  ;;  %v488_v19 = vld [vmem:[#allocation8 + $0x188] sm:$0xff]  ;;  %v1298_v20 = vpack.c.bf16 %v485_v18, %v481_v17  ;;  %v490_v22 = vld [vmem:[#allocation8 + $0x198] sm:$0xff]  ;;  %v487_v27 = vld [vmem:[#allocation8 + $0x180] sm:$0xff] }
  0xed   : > { %1259 = vmatpush1.bf16.msra.mxu0 %v1258_v54  ;;  %v492_v21 = vld [vmem:[#allocation8 + $0x1a8] sm:$0xff]  ;;  %v494_v23 = vld [vmem:[#allocation8 + $0x1b8] sm:$0xff]  ;;  %v491_v28 = vld [vmem:[#allocation8 + $0x1a0] sm:$0xff] }
  0xee   : > { %1291 = vmatpush1.bf16.msra.mxu1 %v1290_v57  ;;  %1261 = vmatprep.subr.bf16.mxu0 %v1260_v61  ;;  %v1268_v25 = vpack.c.bf16 %v492_v21, %v488_v19  ;;  %v1300_v26 = vpack.c.bf16 %v494_v23, %v490_v22  ;;  %v489_v29 = vld [vmem:[#allocation8 + $0x190] sm:$0xff]  ;;  %v1270_v30 = vpack.c.bf16 %v491_v28, %v487_v27  ;;  %v496_v32 = vld [vmem:[#allocation8 + $0x1c8] sm:$0xff]  ;;  %v498_v36 = vld [vmem:[#allocation8 + $0x1d8] sm:$0xff] }
  0xef   : > { %1293 = vmatprep.subr.bf16.mxu1 %v1292_v3  ;;  %v493_v31 = vld [vmem:[#allocation8 + $0x1b0] sm:$0xff]  ;;  %v500_v33 = vld [vmem:[#allocation8 + $0x1e8] sm:$0xff]  ;;  %v502_v37 = vld [vmem:[#allocation8 + $0x1f8] sm:$0xff] }
  0xf0   : > { %v1302_v34 = vpack.c.bf16 %v493_v31, %v489_v29  ;;  %v1272_v35 = vpack.c.bf16 %v500_v33, %v496_v32  ;;  %v767_v47 = vld [vmem:[#allocation11 + $0x80] sm:$0xff]  ;;  %v768_v48 = vld [vmem:[#allocation11 + $0x88] sm:$0xff]  ;;  %v1158_v60 = vld [vmem:[#allocation5] ss:$0 sm:$0xff] }
  0xf1   : > { %1263 = vmatpush1.bf16.msra.mxu0 %v1262_v4  ;;  %v799_v49 = vld [vmem:[#allocation11 + $0x180] sm:$0xff]  ;;  %v1308_v50 = vpack.c.bf16 %v768_v48, %v767_v47  ;;  %v800_v51 = vld [vmem:[#allocation11 + $0x188] sm:$0xff]  ;;  %v1159_v62 = vld [vmem:[#allocation7] ss:$0 sm:$0xff] }
  0xf2   : > { %1295 = vmatpush1.bf16.msra.mxu1 %v1294_v7  ;;  %1265 = vmatprep.subr.bf16.mxu0 %v1264_v11  ;;  %v1340_v52 = vpack.c.bf16 %v800_v51, %v799_v49  ;;  %v751_v63 = vld [vmem:[#allocation11] sm:$0xff]  ;;  %v752_v2 = vld [vmem:[#allocation11 + $0x8] sm:$0xff]  ;;  %v769_v12 = vld [vmem:[#allocation11 + $0x90] sm:$0xff] }
  0xf3   : > { %1297 = vmatprep.subr.bf16.mxu1 %v1296_v15  ;;  %v783_v3 = vld [vmem:[#allocation11 + $0x100] sm:$0xff]  ;;  %v784_v4 = vld [vmem:[#allocation11 + $0x108] sm:$0xff]  ;;  %v1310_v9 = vpack.c.bf16 %v752_v2, %v751_v63  ;;  %v770_v13 = vld [vmem:[#allocation11 + $0x98] sm:$0xff] }
  0xf4   : > { %v1342_v10 = vpack.c.bf16 %v784_v4, %v783_v3  ;;  %v801_v14 = vld [vmem:[#allocation11 + $0x190] sm:$0xff]  ;;  %v1312_v15 = vpack.c.bf16 %v770_v13, %v769_v12  ;;  %v754_v17 = vld [vmem:[#allocation11 + $0x18] sm:$0xff]  ;;  %v771_v23 = vld [vmem:[#allocation11 + $0xa0] sm:$0xff] }
  0xf5   : > { %1267 = vmatpush1.bf16.msra.mxu0 %v1266_v16  ;;  %v802_v16 = vld [vmem:[#allocation11 + $0x198] sm:$0xff]  ;;  %v804_v27 = vld [vmem:[#allocation11 + $0x1a8] sm:$0xff]  ;;  %v755_v28 = vld [vmem:[#allocation11 + $0x20] sm:$0xff] }
  0xf6   : > { %1299 = vmatpush1.bf16.msra.mxu1 %v1298_v20  ;;  %1269 = vmatprep.subr.bf16.mxu0 %v1268_v25  ;;  %v1344_v18 = vpack.c.bf16 %v802_v16, %v801_v14  ;;  %v785_v20 = vld [vmem:[#allocation11 + $0x110] sm:$0xff]  ;;  %v786_v21 = vld [vmem:[#allocation11 + $0x118] sm:$0xff]  ;;  %v803_v25 = vld [vmem:[#allocation11 + $0x1a0] sm:$0xff] }
  0xf7   : > { %1301 = vmatprep.subr.bf16.mxu1 %v1300_v26  ;;  %v1346_v22 = vpack.c.bf16 %v786_v21, %v785_v20  ;;  %v756_v29 = vld [vmem:[#allocation11 + $0x28] sm:$0xff]  ;;  %v787_v32 = vld [vmem:[#allocation11 + $0x120] sm:$0xff]  ;;  %v790_v47 = vld [vmem:[#allocation11 + $0x138] sm:$0xff] }
  0xf8   : > { %v1318_v31 = vpack.c.bf16 %v756_v29, %v755_v28  ;;  %v788_v33 = vld [vmem:[#allocation11 + $0x128] sm:$0xff]  ;;  %v775_v49 = vld [vmem:[#allocation11 + $0xc0] sm:$0xff]  ;;  %v809_v63 = vld [vmem:[#allocation11 + $0x1d0] sm:$0xff] }
  0xf9   : > { %1271 = vmatpush1.bf16.msra.mxu0 %v1270_v30  ;;  %v1348_v30 = vpack.c.bf16 %v804_v27, %v803_v25  ;;  %v807_v51 = vld [vmem:[#allocation11 + $0x1c0] sm:$0xff]  ;;  %v810_v2 = vld [vmem:[#allocation11 + $0x1d8] sm:$0xff]  ;;  %v812_v14 = vld [vmem:[#allocation11 + $0x1e8] sm:$0xff] }
  0xfa   : > { %1303 = vmatpush1.bf16.msra.mxu1 %v1302_v34  ;;  %1273 = vmatprep.subr.bf16.mxu0 %v1272_v35  ;;  %v1350_v34 = vpack.c.bf16 %v788_v33, %v787_v32  ;;  %v773_v35 = vld [vmem:[#allocation11 + $0xb0] sm:$0xff]  ;;  %v1360_v4 = vpack.c.bf16 %v810_v2, %v809_v63  ;;  %v811_v13 = vld [vmem:[#allocation11 + $0x1e0] sm:$0xff]  ;;  %v782_v21 = vld [vmem:[#allocation11 + $0xf8] sm:$0xff]  ;;  %v505_v33 = vlaneseq }
  0xfb   : > { %v1364_v16 = vpack.c.bf16 %v812_v14, %v811_v13  ;;  %v781_v20 = vld [vmem:[#allocation11 + $0xf0] sm:$0xff]  ;;  %v814_v25 = vld [vmem:[#allocation11 + $0x1f8] sm:$0xff] }
  0xfc   : > { %v766_v27 = vld [vmem:[#allocation11 + $0x78] sm:$0xff]  ;;  %v797_v29 = vld [vmem:[#allocation11 + $0x170] sm:$0xff] }
 0x169   : > { %v399_v38 = vpop.xlane.xlu0 %398 }
 0x16a   : > { %v403_v39 = vmul.f32 0.0078125, %v399_v38  ;;  %v495_v38 = vld [vmem:[#allocation8 + $0x1c0] sm:$0xff] }
 0x16c   : > { %v2164_v40 = vsub.f32 %v2157_v0, %v403_v39  ;;  %v1304_v39 = vpack.c.bf16 %v502_v37, %v498_v36  ;;  %v774_v36 = vld [vmem:[#allocation11 + $0xb8] sm:$0xff]  ;;  %v805_v37 = vld [vmem:[#allocation11 + $0x1b0] sm:$0xff] }
 0x16d   : > { %v401_v41 = vpop.xlane.xlu0 %400 }
 0x16e   : > { %v404_v42 = vmul.f32 0.0078125, %v401_v41  ;;  %v407_v43 = vmul.f32 %v2164_v40, %v2164_v40  ;;  %v499_v41 = vld [vmem:[#allocation8 + $0x1e0] sm:$0xff]  ;;  %1305 = vmatprep.subr.bf16.mxu1 %v1304_v39 }
 0x16f   : > { %v806_v39 = vld [vmem:[#allocation11 + $0x1b8] sm:$0xff] }
 0x170   : > { %v2169_v44 = vsub.f32 %v2160_v1, %v404_v42  ;;  %409 = vadd.xlane.f32.xlu1 %v407_v43  ;;  %v497_v42 = vld [vmem:[#allocation8 + $0x1d0] sm:$0xff] }
 0x171   : > { %v501_v43 = vld [vmem:[#allocation8 + $0x1f0] sm:$0xff] }
 0x172   : > { %v408_v45 = vmul.f32 %v2169_v44, %v2169_v44  ;;  %v1306_v46 = vpack.c.bf16 %v501_v43, %v497_v42  ;;  %v758_v42 = vld [vmem:[#allocation11 + $0x38] sm:$0xff]  ;;  %v1352_v43 = vpack.c.bf16 %v806_v39, %v805_v37 }
 0x173   : > { %v503_v37 = vld [vmem:[#allocation10] sm:$0xf] }
 0x174   : > { %411 = vadd.xlane.f32.xlu1 %v408_v45  ;;  %v1274_v45 = vpack.c.bf16 %v499_v41, %v495_v38  ;;  %1307 = vmatpush1.bf16.msra.mxu1 %v1306_v46  ;;  %v1320_v38 = vpack.c.bf16 %v774_v36, %v773_v35  ;;  %v757_v41 = vld [vmem:[#allocation11 + $0x30] sm:$0xff] }
 0x175   : > { %1341 = vmatprep.subr.bf16.mxu1 %v1340_v52  ;;  %v789_v46 = vld [vmem:[#allocation11 + $0x130] sm:$0xff] }
 0x176   : > { %1275 = vmatpush1.bf16.msra.mxu0 %v1274_v45  ;;  %v1322_v45 = vpack.c.bf16 %v758_v42, %v757_v41  ;;  %v1354_v48 = vpack.c.bf16 %v790_v47, %v789_v46 }
 0x177   : > { %1309 = vmatprep.subr.bf16.mxu0 %v1308_v50  ;;  %v776_v50 = vld [vmem:[#allocation11 + $0xc8] sm:$0xff] }
 0x178   : > { %v1324_v52 = vpack.c.bf16 %v776_v50, %v775_v49 }
 0x1fd   : > { %v410_v53 = vpop.xlane.xlu1 %409 }
 0x1fe   : > { %v413_v54 = vmul.f32 0.0078125, %v410_v53  ;;  %v808_v53 = vld [vmem:[#allocation11 + $0x1c8] sm:$0xff] }
 0x200   : > { %v415_v55 = vadd.f32 1e-05, %v413_v54  ;;  %v759_v54 = vld [vmem:[#allocation11 + $0x40] sm:$0xff] }
 0x201   : > { %v412_v56 = vpop.xlane.xlu1 %411 }
 0x202   : > { %1502 = vrsqrt.f32 %v415_v55  ;;  %v414_v57 = vmul.f32 0.0078125, %v412_v56  ;;  %v760_v55 = vld [vmem:[#allocation11 + $0x48] sm:$0xff]  ;;  %v1356_v56 = vpack.c.bf16 %v808_v53, %v807_v51 }
 0x204   : > { %v416_v58 = vadd.f32 1e-05, %v414_v57  ;;  %v1326_v57 = vpack.c.bf16 %v760_v55, %v759_v54 }
 0x206   : > { %1504 = vrsqrt.f32 %v416_v58  ;;  %v791_v58 = vld [vmem:[#allocation11 + $0x140] sm:$0xff] }
 0x20c   : > { %v1503_v59 = vpop.eup %1502 }
 0x20d   : > { %v419_v61 = vmul.f32 %v1503_v59, %v2164_v40  ;;  %v792_v59 = vld [vmem:[#allocation11 + $0x148] sm:$0xff] }
 0x20f   : > { %v428_v5 = vmul.f32 %v1158_v60, %v419_v61  ;;  %v1358_v61 = vpack.c.bf16 %v792_v59, %v791_v58 }
 0x210   : > { %v1505_v6 = vpop.eup %1504 }
 0x211   : > { %v437_v7 = vadd.f32 %v1159_v62, %v428_v5  ;;  %v420_v8 = vmul.f32 %v1505_v6, %v2169_v44  ;;  %v753_v44 = vld [vmem:[#allocation11 + $0x10] sm:$0xff]  ;;  %v762_v6 = vld [vmem:[#allocation11 + $0x58] sm:$0xff] }
 0x212   : > { %v1314_v19 = vpack.c.bf16 %v754_v17, %v753_v44  ;;  %v761_v5 = vld [vmem:[#allocation11 + $0x50] sm:$0xff]  ;;  %v764_v44 = vld [vmem:[#allocation11 + $0x68] sm:$0xff]  ;;  %v795_v17 = vld [vmem:[#allocation11 + $0x160] sm:$0xff] }
 0x213   : > { %590 = vmatmul.mubr.f32.vlgmr.msra.gmra.mrb[0].mxu0 %v437_v7  ;;  %667 = vmatmul.mubr.f32.vlgmr.msra.gmra.mrb[0].mxu1 %v437_v7  ;;  %v429_v11 = vmul.f32 %v1158_v60, %v420_v8  ;;  %v777_v60 = vld [vmem:[#allocation11 + $0xd0] sm:$0xff]  ;;  %v1330_v8 = vpack.c.bf16 %v762_v6, %v761_v5 }
 0x214   : > { %595 = vmatprep.mubr.f32.mxu0 %v1827_v24  ;;  %672 = vmatprep.mubr.f32.mxu1 %v1827_v24  ;;  %v772_v24 = vld [vmem:[#allocation11 + $0xa8] sm:$0xff]  ;;  %v793_v7 = vld [vmem:[#allocation11 + $0x150] sm:$0xff] }
 0x215   : > { %v438_v40 = vadd.f32 %v1159_v62, %v429_v11  ;;  %1311 = vmatpush3.bf16.msra.mxu0 %v1310_v9  ;;  %1343 = vmatpush3.bf16.msra.mxu1 %v1342_v10  ;;  %v1316_v26 = vpack.c.bf16 %v772_v24, %v771_v23  ;;  %v778_v62 = vld [vmem:[#allocation11 + $0xd8] sm:$0xff]  ;;  %v779_v10 = vld [vmem:[#allocation11 + $0xe0] sm:$0xff]  ;;  %v780_v11 = vld [vmem:[#allocation11 + $0xe8] sm:$0xff]  ;;  %v1336_v24 = vpack.c.bf16 %v782_v21, %v781_v20 }
 0x216   : > { %1313 = vmatprep.subr.bf16.mxu0 %v1312_v15  ;;  %1345 = vmatprep.subr.bf16.mxu1 %v1344_v18  ;;  %v1328_v3 = vpack.c.bf16 %v778_v62, %v777_v60  ;;  %v794_v9 = vld [vmem:[#allocation11 + $0x158] sm:$0xff]  ;;  %v1332_v12 = vpack.c.bf16 %v780_v11, %v779_v10  ;;  %v763_v15 = vld [vmem:[#allocation11 + $0x60] sm:$0xff]  ;;  %v796_v18 = vld [vmem:[#allocation11 + $0x168] sm:$0xff] }
 0x217   : > { %596 = vmatmul.mubr.f32.gmra.mrb[2].mxu0 %v438_v40  ;;  %673 = vmatmul.mubr.f32.gmra.mrb[2].mxu1 %v438_v40  ;;  %v1362_v40 = vpack.c.bf16 %v794_v9, %v793_v7  ;;  %v1366_v23 = vpack.c.bf16 %v796_v18, %v795_v17 }
 0x219   : > { %1315 = vmatpush3.bf16.msra.mxu0 %v1314_v19  ;;  %1347 = vmatpush3.bf16.msra.mxu1 %v1346_v22  ;;  %v1334_v19 = vpack.c.bf16 %v764_v44, %v763_v15  ;;  %v813_v22 = vld [vmem:[#allocation11 + $0x1f0] sm:$0xff] }
 0x21a   : > { %1317 = vmatprep.subr.bf16.mxu0 %v1316_v26  ;;  %1349 = vmatprep.subr.bf16.mxu1 %v1348_v30  ;;  %v765_v26 = vld [vmem:[#allocation11 + $0x70] sm:$0xff]  ;;  %v1368_v28 = vpack.c.bf16 %v814_v25, %v813_v22  ;;  %v798_v30 = vld [vmem:[#allocation11 + $0x178] sm:$0xff] }
 0x21b   : > { %v1370_v32 = vpack.c.bf16 %v798_v30, %v797_v29 }
 0x21d   : > { %1319 = vmatpush3.bf16.msra.mxu0 %v1318_v31  ;;  %1351 = vmatpush3.bf16.msra.mxu1 %v1350_v34  ;;  %v1338_v31 = vpack.c.bf16 %v766_v27, %v765_v26  ;;  %v506_v34 = vshrl.u32 %v505_v33, 7 }
 0x21e   : > { %1321 = vmatprep.subr.bf16.mxu0 %v1320_v38  ;;  %1353 = vmatprep.subr.bf16.mxu1 %v1352_v43 }
 0x21f   : > { %v507_v35 = vsub.s32 0, %v506_v34  ;;  %v515_v36 = vsub.s32 2, %v506_v34  ;;  %v511_v38 = vsub.s32 1, %v506_v34  ;;  %v519_v39 = vsub.s32 3, %v506_v34 }
 0x221   : > { %1323 = vmatpush3.bf16.msra.mxu0 %v1322_v45  ;;  %1355 = vmatpush3.bf16.msra.mxu1 %v1354_v48  ;;  %v508_v41 = vrot.slane %v503_v37, %v507_v35  ;;  %v516_v42 = vrot.slane %v503_v37, %v515_v36  ;;  %v512_v43 = vrot.slane %v503_v37, %v511_v38 }
 0x222   : > { %1325 = vmatprep.subr.bf16.mxu0 %v1324_v52  ;;  %1357 = vmatprep.subr.bf16.mxu1 %v1356_v56  ;;  %v520_v45 = vrot.slane %v503_v37, %v519_v39 }
 0x225   : > { %1327 = vmatpush3.bf16.msra.mxu0 %v1326_v57  ;;  %1359 = vmatpush3.bf16.msra.mxu1 %v1358_v61 }
 0x226   : > { %1329 = vmatprep.subr.bf16.mxu0 %v1328_v3  ;;  %1361 = vmatprep.subr.bf16.mxu1 %v1360_v4 }
 0x229   : > { %1331 = vmatpush3.bf16.msra.mxu0 %v1330_v8  ;;  %1363 = vmatpush3.bf16.msra.mxu1 %v1362_v40 }
 0x22a   : > { %1333 = vmatprep.subr.bf16.mxu0 %v1332_v12  ;;  %1365 = vmatprep.subr.bf16.mxu1 %v1364_v16 }
 0x22d   : > { %1335 = vmatpush3.bf16.msra.mxu0 %v1334_v19  ;;  %1367 = vmatpush3.bf16.msra.mxu1 %v1366_v23 }
 0x22e   : > { %1337 = vmatprep.subr.bf16.mxu0 %v1336_v24  ;;  %1369 = vmatprep.subr.bf16.mxu1 %v1368_v28 }
 0x231   : > { %1339 = vmatpush3.bf16.msra.mxu0 %v1338_v31  ;;  %1371 = vmatpush3.bf16.msra.mxu1 %v1370_v32 }
 0x2e6   : > { %v591_v46 = vpop.f32.mrb[0].mxu0  ;;  %v668_v47 = vpop.f32.mrb[0].mxu1 }
 0x2e7   : > { %v2179_v48 = vadd.f32 %v591_v46, %v508_v41  ;;  %v2181_v49 = vadd.f32 %v668_v47, %v516_v42  ;;  %v593_v50 = vpop.f32.mrb[1].mxu0  ;;  %v670_v51 = vpop.f32.mrb[1].mxu1 }
 0x2e8   : > { %v594_v52 = vadd.f32 %v593_v50, %v512_v43  ;;  %v2183_v53 = vadd.f32 %v670_v51, %v520_v45 }
 0x2e9   : > { %v687_v54 = vmul.f32 0.044715, %v2179_v48  ;;  %v689_v55 = vmul.f32 0.044715, %v2181_v49  ;;  %v679_v47 = vmul.f32 0.5, %v2179_v48 }
 0x2ea   : > { %v688_v56 = vmul.f32 0.044715, %v594_v52  ;;  %v690_v57 = vmul.f32 0.044715, %v2183_v53  ;;  %v597_v58 = vpop.f32.mrb[2].mxu0  ;;  %v674_v59 = vpop.f32.mrb[2].mxu1 }
 0x2eb   : > { %v695_v60 = vmul.f32 %v687_v54, %v2179_v48  ;;  %v697_v61 = vmul.f32 %v689_v55, %v2181_v49  ;;  %v2190_v62 = vadd.f32 %v597_v58, %v508_v41  ;;  %v2192_v63 = vadd.f32 %v674_v59, %v516_v42  ;;  %v599_v2 = vpop.f32.mrb[3].mxu0  ;;  %v676_v3 = vpop.f32.mrb[3].mxu1 }
 0x2ec   : > { %v696_v4 = vmul.f32 %v688_v56, %v594_v52  ;;  %v698_v5 = vmul.f32 %v690_v57, %v2183_v53  ;;  %v600_v6 = vadd.f32 %v599_v2, %v512_v43  ;;  %v677_v7 = vadd.f32 %v676_v3, %v520_v45 }
 0x2ed   : > { %v703_v8 = vmul.f32 %v695_v60, %v2179_v48  ;;  %v705_v9 = vmul.f32 %v697_v61, %v2181_v49  ;;  %v691_v10 = vmul.f32 0.044715, %v2190_v62  ;;  %v693_v11 = vmul.f32 0.044715, %v2192_v63 }
 0x2ee   : > { %v692_v40 = vmul.f32 0.044715, %v600_v6  ;;  %v694_v12 = vmul.f32 0.044715, %v677_v7  ;;  %v704_v13 = vmul.f32 %v696_v4, %v594_v52  ;;  %v706_v22 = vmul.f32 %v698_v5, %v2183_v53 }
 0x2ef   : > { %v711_v14 = vadd.f32 %v703_v8, %v2179_v48  ;;  %v713_v15 = vadd.f32 %v705_v9, %v2181_v49  ;;  %v699_v16 = vmul.f32 %v691_v10, %v2190_v62  ;;  %v701_v21 = vmul.f32 %v693_v11, %v2192_v63 }
 0x2f0   : > { %v700_v44 = vmul.f32 %v692_v40, %v600_v6  ;;  %v702_v17 = vmul.f32 %v694_v12, %v677_v7  ;;  %v712_v18 = vadd.f32 %v704_v13, %v594_v52  ;;  %v714_v26 = vadd.f32 %v706_v22, %v2183_v53  ;;  %v1160_v12 = vld [vmem:[#allocation13] ss:$0 sm:$0xff] }
 0x2f1   : > { %v719_v19 = vmul.f32 0.7978846, %v711_v14  ;;  %v721_v20 = vmul.f32 0.7978846, %v713_v15  ;;  %v707_v27 = vmul.f32 %v699_v16, %v2190_v62  ;;  %v709_v32 = vmul.f32 %v701_v21, %v2192_v63 }
 0x2f2   : > { %v720_v23 = vmul.f32 0.7978846, %v712_v18  ;;  %v708_v24 = vmul.f32 %v700_v44, %v600_v6  ;;  %v710_v25 = vmul.f32 %v702_v17, %v677_v7  ;;  %v722_v30 = vmul.f32 0.7978846, %v714_v26 }
 0x2f3   : > { %1506 = vtanh.f32 %v719_v19  ;;  %v715_v31 = vadd.f32 %v707_v27, %v2190_v62  ;;  %v717_v36 = vadd.f32 %v709_v32, %v2192_v63  ;;  %v680_v43 = vmul.f32 0.5, %v594_v52 }
 0x2f4   : > { %1508 = vtanh.f32 %v721_v20  ;;  %v716_v28 = vadd.f32 %v708_v24, %v600_v6  ;;  %v718_v29 = vadd.f32 %v710_v25, %v677_v7  ;;  %v682_v55 = vmul.f32 0.5, %v2183_v53 }
 0x2f5   : > { %1510 = vtanh.f32 %v720_v23  ;;  %v723_v35 = vmul.f32 0.7978846, %v715_v31  ;;  %v725_v37 = vmul.f32 0.7978846, %v717_v36  ;;  %v681_v58 = vmul.f32 0.5, %v2181_v49 }
 0x2f6   : > { %v724_v33 = vmul.f32 0.7978846, %v716_v28  ;;  %v726_v34 = vmul.f32 0.7978846, %v718_v29  ;;  %1512 = vtanh.f32 %v722_v30  ;;  %v684_v60 = vmul.f32 0.5, %v600_v6 }
 0x2f7   : > { %v686_v52 = vmul.f32 0.5, %v677_v7  ;;  %v683_v9 = vmul.f32 0.5, %v2190_v62  ;;  %v685_v6 = vmul.f32 0.5, %v2192_v63 }
 0x2f8   : > { %1514 = vtanh.f32 %v724_v33 }
 0x2f9   : > { %1516 = vtanh.f32 %v726_v34 }
 0x2fa   : > { %1518 = vtanh.f32 %v723_v35 }
 0x2fb   : > { %1520 = vtanh.f32 %v725_v37 }
 0x2fd   : > { %v1507_v38 = vpop.eup %1506 }
 0x2fe   : > { %v1509_v39 = vpop.eup %1508  ;;  %v735_v42 = vadd.f32 1.0, %v1507_v38 }
 0x2ff   : > { %v1511_v41 = vpop.eup %1510  ;;  %v737_v50 = vadd.f32 1.0, %v1509_v39 }
 0x300   : > { %v736_v45 = vadd.f32 1.0, %v1511_v41  ;;  %v1513_v46 = vpop.eup %1512  ;;  %v743_v59 = vmul.f32 %v735_v42, %v679_v47 }
 0x301   : > { %v738_v56 = vadd.f32 1.0, %v1513_v46  ;;  %v745_v48 = vmul.f32 %v737_v50, %v681_v58 }
 0x302   : > { %v1515_v51 = vpop.eup %1514  ;;  %v744_v54 = vmul.f32 %v736_v45, %v680_v43 }
 0x303   : > { %v1517_v57 = vpop.eup %1516  ;;  %v740_v61 = vadd.f32 1.0, %v1515_v51  ;;  %v746_v3 = vmul.f32 %v738_v56, %v682_v55 }
 0x304   : > { %v1519_v2 = vpop.eup %1518  ;;  %886 = vmatprep.mubr.f32.mxu0 %v744_v54  ;;  %v742_v4 = vadd.f32 1.0, %v1517_v57 }
 0x305   : > { %v1521_v5 = vpop.eup %1520  ;;  %887 = vmatmul.mubr.f32.vlgmr.msra.gmra.mrb[4].mxu0 %v743_v59  ;;  %v748_v8 = vmul.f32 %v740_v61, %v684_v60  ;;  %v739_v10 = vadd.f32 1.0, %v1519_v2  ;;  %961 = vmatprep.mubr.f32.mxu1 %v746_v3 }
 0x306   : > { %v750_v53 = vmul.f32 %v742_v4, %v686_v52  ;;  %v741_v11 = vadd.f32 1.0, %v1521_v5  ;;  %962 = vmatmul.mubr.f32.vlgmr.msra.gmra.mrb[4].mxu1 %v745_v48 }
 0x307   : > { %891 = vmatprep.mubr.f32.mxu0 %v748_v8  ;;  %v747_v49 = vmul.f32 %v739_v10, %v683_v9 }
 0x308   : > { %966 = vmatprep.mubr.f32.mxu1 %v750_v53  ;;  %v749_v7 = vmul.f32 %v741_v11, %v685_v6 }
 0x309   : > { %892 = vmatmul.mubr.f32.gmra.mrb[6].mxu0 %v747_v49 }
 0x30a   : > { %967 = vmatmul.mubr.f32.gmra.mrb[6].mxu1 %v749_v7 }
 0x3d8   : > { %v1200_v40 = vpop.f32.mrb[4].mxu0 }
 0x3d9   : > { %v1201_v13 = vpop.f32.mrb[5].mxu0  ;;  %v1238_v14 = vpop.f32.mrb[4].mxu1 }
 0x3da   : > { %v1202_v62 = vadd.f32 %v1201_v13, %v1200_v40  ;;  %v1239_v15 = vpop.f32.mrb[5].mxu1 }
 0x3db   : > { %v1240_v44 = vadd.f32 %v1239_v15, %v1238_v14 }
 0x3dc   : > { %v889_v16 = vadd.f32 %v1202_v62, %v1160_v12  ;;  %v1203_v17 = vpop.f32.mrb[6].mxu0 }
 0x3dd   : > { %v1204_v18 = vpop.f32.mrb[7].mxu0  ;;  %v1241_v20 = vpop.f32.mrb[6].mxu1 }
 0x3de   : > { %v964_v19 = vadd.f32 %v1240_v44, %v889_v16  ;;  %v1205_v63 = vadd.f32 %v1204_v18, %v1203_v17  ;;  %v1242_v21 = vpop.f32.mrb[7].mxu1 }
 0x3df   : > { %v1243_v24 = vadd.f32 %v1242_v21, %v1241_v20 }
 0x3e0   : > { %v972_v22 = vadd.f32 %v964_v19, %v2157_v0  ;;  %v894_v23 = vadd.f32 %v1205_v63, %v1160_v12 }
 0x3e2   : > { %974 = vst [vmem:[%s393_s8] sm:$0xff] %v972_v22  ;;  %v969_v25 = vadd.f32 %v1243_v24, %v894_v23 }
 0x3e4   : > { %v973_v26 = vadd.f32 %v969_v25, %v2160_v1 }
 0x3e6   : > { %975 = vst [vmem:[%s393_s8 + $0x8] sm:$0xff] %v973_v26 }
 0x3e7   : > { %1733 = shalt.err (!%p1730_p8)
}
 0x3e8   : > { %s1734_s19 = scalar_lea.hbm %s2223_s14, 256  ;;  %s1738_s1 = scalar_lea.hbm %s2305_s21, 512 }
 0x3e9   : > { %p1735_p9 = scmp.ne.s32.totalorder %s2223_s14, %s1734_s19  ;;  %p1739_p3 = scmp.lt.u32.totalorder %s2223_s14, %s2305_s21 }
 0x3ea   : > { %p1740_p7 = scmp.lt.u32.totalorder %s1738_s1, %s1734_s19  ;;  %p1742_p11 = scmp.lt.u32.totalorder %s1734_s19, %s2223_s14 }
 0x3eb   : > { %p1736_p4 = pnand %p1735_p9, %p2306_p0 }
 0x3ec   : > { %p1741_p12 = por %p1740_p7, %p1739_p3 }
 0x3ed   : > { %p1737_p6 = pneg %p1736_p4 }
 0x3ee   : > { %p1743_p5 = por %p1742_p11, %p1741_p12 }
 0x3f0   : > { %p1744_p1 = pnand %p1743_p5, %p1737_p6 }
 0x3f2   : > { %1747 = shalt.err (!%p1744_p1)
}
 0x3f3   : > { %s1829_s17 = smov 128   ;;  %s1830_s3 = smov 8  }
 0x3f4   : > { %1398 = dma.vmem_to_hbm [thread:$0]  (%p2306_p0), %s2218_s9, 256, %s2223_s14, %s977_s18, %s1829_s17, %s1829_s17, %s1830_s3  }
 0x3f5 PF: > { %s1007_s12 = sand.u32 1, %s1794_s24   ;;  %p2307_p10 = scmp.ne.s32.totalorder %s2301_s23, 0 }
 0x3f6   : > { %p2308_p13 = scmp.ge.s32.totalorder %s1814_s29, 2  ;;  %s1008_s27 = scalar_lea.sflag [#allocation4], %s1007_s12 }
 0x3f8   : > { %p1424_p2 = pnand %p2308_p13, %p2307_p10 }
 0x3fa   : > { %1789 = dma.done.wait (!%p1424_p2), %s1008_s27, 256  }
 0x3fb   : > { %1791 = vsyncadd (!%p1424_p2), %s1008_s27, 4294967040  ;;  %s26_s29 = sadd.s32 1, %s1814_s29   ;;  %s2309_s24 = smov %s1798_s25 }
 0x3fc   : > { %p23_p8 = scmp.ge.s32.totalorder %s26_s29, 4   ;;  %s2310_s25 = smov %s1802_s26 }
 0x3fd   : > { %s2311_s26 = smov %s2079_s20  ;;  %s2312_s27 = smov %s1810_s28 }
 0x3fe   : > { %s2313_s28 = smov %s2315_s16  ;;  %25 = sbr.rel (!%p23_p8) target bundleno = 13 (0xd), region = 117 }
 0x405   :  { %1013 = vsyncpa [#allocation3], 1 }
 0x406   :  { %1015 = vsyncpa [#allocation3 + $0x1], 1 }
 0x407   :  { %1016 = vsyncpa [#allocation6], 1 }
 0x408   :  { %1017 = vsyncpa [#allocation9], 1 }
 0x409   :  { %1018 = vsyncpa [#allocation12], 1 }
 0x40a   :  { %1019 = vsyncpa [#allocation4], 1 }
 0x40b   :  { %1021 = vsyncpa [#allocation4 + $0x1], 1 }

</bundles_post_ra>
